<compile_context>
chip_gen: v5e
topology: v5e:2x2
jax: 0.10.0
libtpu: 0.0.40
codegen_flags: <defaults>
</compile_context>

<pallas_src>
import jax
import jax.numpy as jnp
from jax.experimental import pallas as pl
from jax.experimental.pallas import tpu as pltpu

WEIGHT_INIT_RANGE = 0.1
_NEG_BIG = -1e30  # bias for padded vocab columns -> never affects max / lse


def _round_up(x, m):
    return ((x + m - 1) // m) * m


def cbow_kernel(hidden_ref, w_ref, b_ref, logits_ref, lse_ref, m_sc, l_sc):
    """Grid = (batch_tiles, vocab_tiles); vocab is the innermost 'arbitrary' axis.

    hidden_ref : (TB, Dp) bf16  -- resident across the vocab axis
    w_ref      : (Dp, TV) bf16  -- new weight tile per vocab step
    b_ref      : (1,  TV) f32
    logits_ref : (TB, TV) f32   -- vocab-tiled raw logits, written every step
    lse_ref    : (TB, 1)  f32   -- per-row log-sum-exp, written on last step
    m_sc, l_sc : (TB, 1)  f32   -- online-softmax running max / sum
    """
    v = pl.program_id(1)
    nv = pl.num_programs(1)

    @pl.when(v == 0)
    def _():
        m_sc[...] = jnp.full(m_sc.shape, -jnp.inf, dtype=m_sc.dtype)
        l_sc[...] = jnp.zeros(l_sc.shape, dtype=l_sc.dtype)

    # (TB, Dp) @ (Dp, TV) on the MXU with f32 accumulate; softmax/elementwise
    # math stays in f32 (v5e has no bf16 VPU/EUP).
    logits = jnp.dot(hidden_ref[...], w_ref[...],
                     preferred_element_type=jnp.float32) + b_ref[...]

    # Online (flash-style) log-sum-exp over the tiled vocab axis.
    m_prev = m_sc[...]
    m_new = jnp.maximum(m_prev, jnp.max(logits, axis=-1, keepdims=True))
    l_sc[...] = (l_sc[...] * jnp.exp(m_prev - m_new)
                 + jnp.sum(jnp.exp(logits - m_new), axis=-1, keepdims=True))
    m_sc[...] = m_new

    # Lane-dense per-step store of the raw logits tile (pipelined writeback).
    logits_ref[...] = logits

    # Last vocab tile for this batch tile: emit the per-row LSE.
    @pl.when(v == nv - 1)
    def _():
        lse_ref[...] = m_sc[...] + jnp.log(l_sc[...])


def pack_output_layer(lin_weight, lin_bias, *, tv=1024):
    """One-time packing of the linear layer: transpose + pad + bf16 cast.

    Hoisted out of the per-call path so the kernel's bf16 weight stream is the
    only per-forward weight HBM traffic.
    """
    V, D = lin_weight.shape
    TV = min(tv, _round_up(V, 128))      # lane/MXU-aligned vocab tile
    Vp = _round_up(V, TV)
    Dp = _round_up(D, 128)               # K dim padded to a full lane group

    w_p = jnp.zeros((Dp, Vp), jnp.float32).at[:D, :V].set(lin_weight.T)
    w_p = w_p.astype(jnp.bfloat16)
    # Padded vocab columns get a huge negative bias so they never affect the lse.
    b_p = jnp.full((1, Vp), _NEG_BIG, jnp.float32).at[0, :V].set(lin_bias)

    return dict(w=w_p, b=b_p, V=V, D=D, TV=TV, Vp=Vp, Dp=Dp)


def cbow_forward(inputs, emb_table, packed, *, tb=128):
    """inputs: (B, C) int32, emb_table: (V, D), packed: pack_output_layer(...)."""
    # Embedding gather + mean over the context fuse in plain JAX; only the
    # (B, D) hidden state is handed to the kernel (no (B, C, D) HBM round trip).
    hidden = jnp.mean(emb_table[inputs], axis=1)                    # (B, D) f32

    B = hidden.shape[0]
    V, D = packed["V"], packed["D"]
    TV, Vp, Dp = packed["TV"], packed["Vp"], packed["Dp"]

    # Batch tile: sublane-dense (multiple of 8).  If the whole batch fits in a
    # single tile, split it so both v7x TensorCores get a batch tile to chew on.
    TB = min(tb, _round_up(B, 8))
    Bp = _round_up(B, TB)
    if Bp // TB < 2 and B > 8:
        TB = _round_up((B + 1) // 2, 8)
        Bp = _round_up(B, TB)

    # Pad + cast the hidden state to bf16 (f32 accumulation inside the kernel).
    hidden_p = jnp.zeros((Bp, Dp), jnp.float32).at[:B, :D].set(hidden)
    hidden_p = hidden_p.astype(jnp.bfloat16)

    grid = (Bp // TB, Vp // TV)

    # VMEM budget: double-buffered tiles + scratch, with headroom; clamped so
    # it stays comfortably inside v7x's 64 MiB physical VMEM.
    est_vmem = (2 * TB * Dp * 2          # hidden tiles (bf16)
                + 2 * Dp * TV * 2        # weight tiles (bf16)
                + 2 * 8 * TV * 4         # bias tiles (sublane-padded, f32)
                + 2 * TB * TV * 4        # logits output tiles (f32)
                + 2 * TB * 128 * 4       # lse output (lane-padded, f32)
                + 2 * TB * 128 * 4)      # m/l scratch (lane-padded, f32)
    vmem_limit = int(min(max(2 * est_vmem, 32 * 1024 * 1024), 96 * 1024 * 1024))

    logits, lse = pl.pallas_call(
        cbow_kernel,
        out_shape=(
            jax.ShapeDtypeStruct((Bp, Vp), jnp.float32),   # raw logits
            jax.ShapeDtypeStruct((Bp, 1), jnp.float32),    # per-row lse
        ),
        grid=grid,
        in_specs=[
            pl.BlockSpec((TB, Dp), lambda b, v: (b, 0)),   # hidden tile (resident over v)
            pl.BlockSpec((Dp, TV), lambda b, v: (0, v)),   # weight tile
            pl.BlockSpec((1, TV), lambda b, v: (0, v)),    # bias tile
        ],
        out_specs=(
            pl.BlockSpec((TB, TV), lambda b, v: (b, v)),   # vocab-tiled logits
            pl.BlockSpec((TB, 1), lambda b, v: (b, 0)),    # lse (resident over v)
        ),
        scratch_shapes=[
            pltpu.VMEM((TB, 1), jnp.float32),   # running max
            pltpu.VMEM((TB, 1), jnp.float32),   # running sum
        ],
        compiler_params=pltpu.CompilerParams(
            dimension_semantics=("parallel", "arbitrary"),
            vmem_limit_bytes=vmem_limit,
        ),
    )(hidden_p, packed["w"], packed["b"])

    # Broadcast subtract in XLA (one cheap fused pass); slice away padding.
    # TODO(synk): for training-only use, return (lse, gathered target logit)
    # instead of the full (B, V) log-prob matrix to avoid the f32 writeback.
    return logits[:B, :V] - lse[:B]


if __name__ == "__main__":
    # Small, deterministic synthetic configuration (multi-tile on both axes).
    vocab_size = 2000
    embedding_dim = 32
    batch = 12
    context = 8

    key = jax.random.PRNGKey(0)
    k_emb, k_w, k_b, k_idx = jax.random.split(key, 4)

    # nn.Embedding default init: N(0, 1); init_weights leaves embedding untouched.
    emb_table = jax.random.normal(k_emb, (vocab_size, embedding_dim), dtype=jnp.float32)

    # Linear weight & bias: uniform(-WEIGHT_INIT_RANGE, WEIGHT_INIT_RANGE).
    lin_weight = jax.random.uniform(
        k_w, (vocab_size, embedding_dim), dtype=jnp.float32,
        minval=-WEIGHT_INIT_RANGE, maxval=WEIGHT_INIT_RANGE)
    lin_bias = jax.random.uniform(
        k_b, (vocab_size,), dtype=jnp.float32,
        minval=-WEIGHT_INIT_RANGE, maxval=WEIGHT_INIT_RANGE)

    # Integer context-word ids.
    inputs = jax.random.randint(k_idx, (batch, context), 0, vocab_size, dtype=jnp.int32)

    # One-time parameter packing (hoisted out of the per-call path).
    packed = pack_output_layer(lin_weight, lin_bias, tv=512)

    log_probs = cbow_forward(inputs, emb_table, packed)
    jax.block_until_ready(log_probs)

    assert log_probs.shape == (batch, vocab_size)

    # Sanity 1: rows of exp(log_probs) should sum to ~1.
    row_sums = jnp.exp(log_probs).sum(axis=-1)
    assert bool(jnp.all(jnp.abs(row_sums - 1.0) < 1e-3))

    # Sanity 2: match a pure-JAX f32 reference (bf16 matmul tolerance).
    hidden_ref = jnp.mean(emb_table[inputs], axis=1)
    ref = jax.nn.log_softmax(hidden_ref @ lin_weight.T + lin_bias, axis=-1)
    assert bool(jnp.max(jnp.abs(log_probs - ref)) < 1e-2)

    print("KERNEL_OK")
</pallas_src>

<mosaic_0001>
module attributes {stable_mosaic.version = 11 : i64} {
  func.func @cbow_kernel(%arg0: i32, %arg1: i32, %arg2: memref<8x128xbf16, #tpu.memory_space<vmem>>, %arg3: memref<128x512xbf16, #tpu.memory_space<vmem>>, %arg4: memref<1x512xf32, #tpu.memory_space<vmem>>, %arg5: memref<8x512xf32, #tpu.memory_space<vmem>>, %arg6: memref<8x1xf32, #tpu.memory_space<vmem>>, %arg7: memref<8x1xf32, #tpu.memory_space<vmem>>, %arg8: memref<8x1xf32, #tpu.memory_space<vmem>>) attributes {dimension_semantics = [#tpu.dimension_semantics<parallel>, #tpu.dimension_semantics<arbitrary>], iteration_bounds = array<i64: 2, 4>, scalar_prefetch = 0 : i64, scratch_operands = 2 : i64, tpu.core_type = #tpu.core_type<tc>, window_params = [{transform_indices = @transform_0, window_bounds = array<i64: 8, 128>}, {transform_indices = @transform_1, window_bounds = array<i64: 128, 512>}, {transform_indices = @transform_2, window_bounds = array<i64: 1, 512>}, {transform_indices = @transform_3, window_bounds = array<i64: 8, 512>}, {transform_indices = @transform_4, window_bounds = array<i64: 8, 1>}]} {
    %c0_i32 = arith.constant 0 : i32
    %0 = arith.cmpi eq, %arg1, %c0_i32 : i32
    %1 = arith.extui %0 : i1 to i32
    %c0_i32_0 = arith.constant 0 : i32
    %2 = arith.cmpi ne, %1, %c0_i32_0 : i32
    scf.if %2 {
      %cst_19 = arith.constant 0xFF800000 : f32
      %29 = vector.broadcast %cst_19 : f32 to vector<8x1xf32>
      %c0_20 = arith.constant 0 : index
      %c0_21 = arith.constant 0 : index
      %30 = vector.load %arg7[%c0_20, %c0_21] : memref<8x1xf32, #tpu.memory_space<vmem>>, vector<8x1xf32>
      tpu.vector_store %arg7[%c0_20, %c0_21], %29 {strides = array<i32>} : memref<8x1xf32, #tpu.memory_space<vmem>>, vector<8x1xf32>,
      %cst_22 = arith.constant 0.000000e+00 : f32
      %31 = vector.broadcast %cst_22 : f32 to vector<8x1xf32>
      %c0_23 = arith.constant 0 : index
      %c0_24 = arith.constant 0 : index
      %32 = vector.load %arg8[%c0_23, %c0_24] : memref<8x1xf32, #tpu.memory_space<vmem>>, vector<8x1xf32>
      tpu.vector_store %arg8[%c0_23, %c0_24], %31 {strides = array<i32>} : memref<8x1xf32, #tpu.memory_space<vmem>>, vector<8x1xf32>,
    } else {
    }
    %c0 = arith.constant 0 : index
    %c0_1 = arith.constant 0 : index
    %3 = vector.load %arg2[%c0, %c0_1] : memref<8x128xbf16, #tpu.memory_space<vmem>>, vector<8x128xbf16>
    %c0_2 = arith.constant 0 : index
    %c0_3 = arith.constant 0 : index
    %4 = vector.load %arg3[%c0_2, %c0_3] : memref<128x512xbf16, #tpu.memory_space<vmem>>, vector<128x512xbf16>
    %cst = arith.constant dense<0.000000e+00> : vector<8x512xf32>
    %5 = tpu.matmul %3, %4, %cst {dimension_numbers = #tpu.dot_dimension_numbers<[1], [0], [0], [1], [0, 0, 1, 1], [], []>} : vector<8x128xbf16>, vector<128x512xbf16>, vector<8x512xf32> -> vector<8x512xf32>
    %c0_4 = arith.constant 0 : index
    %c0_5 = arith.constant 0 : index
    %6 = vector.load %arg4[%c0_4, %c0_5] : memref<1x512xf32, #tpu.memory_space<vmem>>, vector<1x512xf32>
    %7 = vector.broadcast %6 : vector<1x512xf32> to vector<8x512xf32>
    %8 = arith.addf %5, %7 : vector<8x512xf32>
    %c0_6 = arith.constant 0 : index
    %c0_7 = arith.constant 0 : index
    %9 = vector.load %arg7[%c0_6, %c0_7] : memref<8x1xf32, #tpu.memory_space<vmem>>, vector<8x1xf32>
    %cst_8 = arith.constant dense<0xFF800000> : vector<8xf32>
    %10 = vector.multi_reduction <maximumf>, %8, %cst_8 [1] : vector<8x512xf32> to vector<8xf32>
    %11 = vector.shape_cast %10 : vector<8xf32> to vector<8x1xf32>
    %12 = arith.maximumf %9, %11 : vector<8x1xf32>
    %c0_9 = arith.constant 0 : index
    %c0_10 = arith.constant 0 : index
    %13 = vector.load %arg8[%c0_9, %c0_10] : memref<8x1xf32, #tpu.memory_space<vmem>>, vector<8x1xf32>
    %14 = arith.subf %9, %12 : vector<8x1xf32>
    %15 = math.exp %14 : vector<8x1xf32>
    %16 = arith.mulf %13, %15 : vector<8x1xf32>
    %17 = vector.broadcast %12 : vector<8x1xf32> to vector<8x512xf32>
    %18 = arith.subf %8, %17 : vector<8x512xf32>
    %19 = math.exp %18 : vector<8x512xf32>
    %cst_11 = arith.constant dense<0.000000e+00> : vector<8xf32>
    %20 = vector.multi_reduction <add>, %19, %cst_11 [1] : vector<8x512xf32> to vector<8xf32>
    %21 = vector.shape_cast %20 : vector<8xf32> to vector<8x1xf32>
    %22 = arith.addf %16, %21 : vector<8x1xf32>
    %c0_12 = arith.constant 0 : index
    %c0_13 = arith.constant 0 : index
    %23 = vector.load %arg8[%c0_12, %c0_13] : memref<8x1xf32, #tpu.memory_space<vmem>>, vector<8x1xf32>
    tpu.vector_store %arg8[%c0_12, %c0_13], %22 {strides = array<i32>} : memref<8x1xf32, #tpu.memory_space<vmem>>, vector<8x1xf32>,
    %c0_14 = arith.constant 0 : index
    %c0_15 = arith.constant 0 : index
    %24 = vector.load %arg7[%c0_14, %c0_15] : memref<8x1xf32, #tpu.memory_space<vmem>>, vector<8x1xf32>
    tpu.vector_store %arg7[%c0_14, %c0_15], %12 {strides = array<i32>} : memref<8x1xf32, #tpu.memory_space<vmem>>, vector<8x1xf32>,
    %c0_16 = arith.constant 0 : index
    %c0_17 = arith.constant 0 : index
    %25 = vector.load %arg5[%c0_16, %c0_17] : memref<8x512xf32, #tpu.memory_space<vmem>>, vector<8x512xf32>
    tpu.vector_store %arg5[%c0_16, %c0_17], %8 {strides = array<i32>} : memref<8x512xf32, #tpu.memory_space<vmem>>, vector<8x512xf32>,
    %c3_i32 = arith.constant 3 : i32
    %26 = arith.cmpi eq, %arg1, %c3_i32 : i32
    %27 = arith.extui %26 : i1 to i32
    %c0_i32_18 = arith.constant 0 : i32
    %28 = arith.cmpi ne, %27, %c0_i32_18 : i32
    scf.if %28 {
      %c0_19 = arith.constant 0 : index
      %c0_20 = arith.constant 0 : index
      %29 = vector.load %arg7[%c0_19, %c0_20] : memref<8x1xf32, #tpu.memory_space<vmem>>, vector<8x1xf32>
      %c0_21 = arith.constant 0 : index
      %c0_22 = arith.constant 0 : index
      %30 = vector.load %arg8[%c0_21, %c0_22] : memref<8x1xf32, #tpu.memory_space<vmem>>, vector<8x1xf32>
      %31 = math.log %30 : vector<8x1xf32>
      %32 = arith.addf %29, %31 : vector<8x1xf32>
      %c0_23 = arith.constant 0 : index
      %c0_24 = arith.constant 0 : index
      %33 = vector.load %arg6[%c0_23, %c0_24] : memref<8x1xf32, #tpu.memory_space<vmem>>, vector<8x1xf32>
      tpu.vector_store %arg6[%c0_23, %c0_24], %32 {strides = array<i32>} : memref<8x1xf32, #tpu.memory_space<vmem>>, vector<8x1xf32>,
    } else {
    }
    return
  }
  func.func @transform_0(%arg0: i32, %arg1: i32) -> (i32, i32) {
    %c0_i32 = arith.constant 0 : i32
    %c0_i32_0 = arith.constant 0 : i32
    return %arg0, %c0_i32 : i32, i32
  }
  func.func @transform_1(%arg0: i32, %arg1: i32) -> (i32, i32) {
    %c0_i32 = arith.constant 0 : i32
    %c0_i32_0 = arith.constant 0 : i32
    return %c0_i32, %arg1 : i32, i32
  }
  func.func @transform_2(%arg0: i32, %arg1: i32) -> (i32, i32) {
    %c0_i32 = arith.constant 0 : i32
    %c0_i32_0 = arith.constant 0 : i32
    return %c0_i32, %arg1 : i32, i32
  }
  func.func @transform_3(%arg0: i32, %arg1: i32) -> (i32, i32) {
    %c0_i32 = arith.constant 0 : i32
    return %arg0, %arg1 : i32, i32
  }
  func.func @transform_4(%arg0: i32, %arg1: i32) -> (i32, i32) {
    %c0_i32 = arith.constant 0 : i32
    %c0_i32_0 = arith.constant 0 : i32
    return %arg0, %c0_i32 : i32, i32
  }
}

</mosaic_0001>

<bundles_post_ra>
// kernel: tpu_custom_call.1
= control target key start
LH: loop header
LB: loop body
LE: loop exit
PB: predicated region body
PF: predicated region fallthrough
CT: control target
= control target key end

     0   :  { %s1791_s0 = inlined_call_operand.hbm [shape: bf16[16,128], index: 0, kind: input, shape index: {}]   ;;  %s1792_s1 = inlined_call_operand.hbm [shape: bf16[128,2048], index: 1, kind: input, shape index: {}]   ;;  %s1793_s2 = inlined_call_operand.hbm [shape: f32[1,2048], index: 2, kind: input, shape index: {}]   ;;  %s1794_s3 = inlined_call_operand.hbm [shape: f32[16,2048], index: 3, kind: output, shape index: {0}]   ;;  %s1795_s4 = inlined_call_operand.vmem [shape: f32[16,1], index: 4, kind: output, shape index: {1}]  }
   0x1   :  { %1807 = sst [smem:[#allocation26_spill]] %s1792_s1 }
   0x2   :  { %1808 = sst [smem:[#allocation27_spill]] %s1794_s3 }
   0x3   :  { %1809 = sst [smem:[#allocation28_spill]] %s1795_s4 }
   0x4   :  { %10 = vsyncpa [#allocation5], 0 }
   0x5   :  { %12 = vsyncpa [#allocation5 + $0x1], 0 }
   0x6   :  { %13 = vsyncpa [#allocation8], 0 }
   0x7   :  { %15 = vsyncpa [#allocation8 + $0x1], 0 }
   0x8   :  { %16 = vsyncpa [#allocation6], 0 }
   0x9   :  { %18 = vsyncpa [#allocation6 + $0x1], 0  ;;  %s1426_s15 = smov 0   ;;  %s1428_s16 = smov 0  }
   0xa   :  { %s1430_s17 = smov 0   ;;  %s1432_s18 = smov 0  }
   0xb   :  { %s1434_s19 = smov 0   ;;  %s1436_s20 = smov 0  }
   0xc   :  { %s1438_s21 = smov 0   ;;  %s1440_s22 = smov 0  }
   0xd   :  { %s1442_s23 = smov 0   ;;  %s1444_s24 = smov 0  }
   0xe   :  { %s1446_s25 = smov 0   ;;  %s1448_s26 = smov 0  }
   0xf   :  { %s1450_s27 = smov 0   ;;  %s1452_s28 = smov 0  }
  0x10 LB: > { %1810 = sst [smem:[#allocation14_spill]] %s1341_s15  ;;  %p51_p0 = scmp.eq.s32.totalorder %s1393_s28, 0  ;;  %s1393_s28 = sphi %s1452_s28, %s24_s28   ;;  %s1389_s27 = sphi %s1450_s27, %s1861_s27   ;;  %s1385_s26 = sphi %s1448_s26, %s1860_s26   ;;  %s1381_s25 = sphi %s1446_s25, %s1847_s25   ;;  %s1377_s24 = sphi %s1444_s24, %s1859_s24   ;;  %s1373_s23 = sphi %s1442_s23, %s1858_s23   ;;  %s1369_s22 = sphi %s1440_s22, %s1857_s22   ;;  %s1365_s21 = sphi %s1438_s21, %s1856_s21   ;;  %s1361_s20 = sphi %s1436_s20, %s1855_s20   ;;  %s1357_s19 = sphi %s1434_s19, %s1854_s19   ;;  %s1353_s18 = sphi %s1432_s18, %s1853_s18   ;;  %s1349_s17 = sphi %s1430_s17, %s1843_s17   ;;  %s1345_s16 = sphi %s1428_s16, %s1852_s16   ;;  %s1341_s15 = sphi %s1426_s15, %s1851_s15  }
  0x11   : > { %1811 = sst [smem:[#allocation15_spill]] %s1349_s17  ;;  %p76_p1 = scmp.ne.s32.totalorder %s1361_s20, %s1357_s19 }
  0x12   : > { %1812 = sst [smem:[#allocation16_spill]] %s1373_s23  ;;  %p1020_p2 = scmp.lt.s32.totalorder %s1393_s28, 8 }
  0x13   : > { %1813 = sst [smem:[#allocation17_spill]] %s1377_s24  ;;  %s205_s30 = sand.u32 1, %s1393_s28  }
  0x14   : > { %1814 = sst [smem:[#allocation18_spill]] %s1389_s27  ;;  %p78_p3 = por %p76_p1, %p51_p0 }
  0x15   : > { %s1796_s5 = sand.u32 1, %s1361_s20   ;;  %s965_s6 = sshll.u32 %s1385_s26, 4 }
  0x16   : > { %s818_s7 = sshll.u32 %s1796_s5, 8  ;;  %s1815_s1 = sld [smem:[#allocation26_spill]] }
  0x17   : > { %s209_s12 = scalar_lea.vmem [#allocation7], %s818_s7  ;;  %p1513_p4 = pnand %p1020_p2, %p78_p3 }
  0x18   : > { %s217_s13 = sshll.u32 %s209_s12, 4  ;;  %s1517_s8 = scalar_lea.sflag [#allocation8], %s205_s30  ;;  %s218_s13 = int_to_ptr.vmem [resolvable:$true] %s217_s13 }
  0x19   : > { %s1396_s9 = smov 256   ;;  %s1397_s7 = smov 16  }
  0x1a   : > { %p823_p5 = scmp.ge.s32.totalorder %s1393_s28, 1  ;;  %p244_p6 = scmp.lt.s32.totalorder %s1393_s28, 9 }
  0x1b   : > { %s1529_s30 = sadd.s32 4294967295, %s1393_s28   ;;  %s33_s5 = sadd.s32 1, %s1385_s26 }
  0x1c   : > { %s214_s10 = scalar_lea.hbm %s1815_s1, %s965_s6  ;;  %s1395_s6 = smov 1024  }
  0x1d   : > { %s215_s11 = sshll.u32 %s214_s10, 4  ;;  %p1524_p7 = pnand %p823_p5, %p244_p6  ;;  %s216_s11 = int_to_ptr.hbm [resolvable:$true] %s215_s11 }
  0x1e   : > { %1012 = dma.hbm_to_vmem [thread:$0]  (!%p1513_p4), %s216_s11, 4096, %s218_s13, %s1517_s8, %s1395_s6, %s1396_s9, %s1397_s7  }
  0x1f   : > { %p34_p8 = scmp.ge.s32.totalorder %s33_s5, 4  ;;  %s36_s29 = sadd.s32 1, %s1389_s27 }
  0x20   : > { %s43_s1 = sadd.s32 1, %s1373_s23  ;;  %p50_p9 = scmp.ne.s32.totalorder %s1373_s23, %s1369_s22 }
  0x21   : > { %s1863_s5 = smov (%p34_p8, %s33_s5), 0  ;;  %s1865_s29 = smov (!%p34_p8, %s36_s29), %s1389_s27 }
  0x22   : > { %1818 = sst [smem:[#allocation19_spill]] %s1863_s5  ;;  %p1542_p10 = por %p51_p0, %p50_p9 }
  0x23   : > { %p56_p11 = scmp.ne.s32.totalorder %s1369_s22, %s1365_s21  ;;  %p38_p12 = scmp.ge.s32.totalorder %s1865_s29, 2 }
  0x24   : > { %p57_p13 = scmp.eq.s32.totalorder %s1529_s30, 0  ;;  %s66_s13 = ssub.s32 %s1385_s26, %s1863_s5 }
  0x25   : > { %p82_p1 = scmp.ne.s32.totalorder %s1357_s19, %s1353_s18  ;;  %s1867_s29 = smov (%p38_p12, %s1865_s29), 0 }
  0x26   : > { %1820 = sst [smem:[#allocation20_spill]] %s1867_s29  ;;  %p1555_p0 = por %p57_p13, %p56_p11 }
  0x27   : > { %p67_p3 = scmp.eq.s32.totalorder %s66_s13, 0  ;;  %s40_s21 = ssub.s32 %s1389_s27, %s1867_s29 }
  0x28   : > { %p1561_p5 = por %p82_p1, %p57_p13  ;;  %p41_p6 = scmp.eq.s32.totalorder %s40_s21, 0 }
  0x29   : > { %s120_s18 = sor.u32 %s66_s13, %s40_s21  ;;  %s1823_s7 = sadd.s32 1, %s1361_s20 }
  0x2a   : > { %s1568_s12 = scalar_select %p67_p3, %s1361_s20, %s1823_s7  }
  0x2b   : > { %s1571_s5 = scalar_select %p41_p6, %s1373_s23, %s43_s1  }
  0x2c   : > { %1824 = sst [smem:[#allocation21_spill]] %s1568_s12  ;;  %p121_p8 = scmp.eq.s32.totalorder %s120_s18, 0 }
  0x2d   : > { %1825 = sst [smem:[#allocation22_spill]] %s1571_s5  ;;  %s123_s3 = sadd.s32 1, %s1349_s17 }
  0x2e   : > { %p133_p9 = scmp.ne.s32.totalorder %s1349_s17, %s1345_s16  ;;  %p134_p11 = scmp.eq.s32.totalorder %s1529_s30, 7 }
  0x2f   : > { %s1578_s29 = scalar_select %p121_p8, %s1349_s17, %s123_s3  }
  0x30   : > { %p1580_p12 = por %p134_p11, %p133_p9  ;;  %p139_p13 = scmp.ne.s32.totalorder %s1345_s16, %s1341_s15 }
  0x31   : > { %1826 = sst [smem:[#allocation23_spill]] %s1578_s29  ;;  %s1829_s13 = sadd.s32 4294967294, %s1393_s28  }
  0x32   : > { %s1827_s24 = scalar_select %p1580_p12, 1, 0 }
  0x33   : > { %p140_p1 = scmp.eq.s32.totalorder %s1829_s13, 7  ;;  %s186_s21 = sand.u32 1, %s1373_s23  }
  0x34   : > { %1828 = sst [smem:[#allocation24_spill]] %s1827_s24  ;;  %s816_s1 = sshll.u32 %s186_s21, 2 }
  0x35   : > { %p1589_p3 = por %p140_p1, %p139_p13  ;;  %s817_s7 = sshll.u32 %s1389_s27, 2 }
  0x36   : > { %s190_s5 = scalar_lea.vmem [#allocation4], %s816_s1  ;;  %s194_s29 = scalar_lea.hbm %s1791_s0, %s817_s7 }
  0x37   : > { %s1830_s18 = scalar_select %p1589_p3, 1, 0 }
  0x38   : > { %s198_s12 = sshll.u32 %s190_s5, 4  ;;  %s196_s17 = sshll.u32 %s194_s29, 4  ;;  %s199_s12 = int_to_ptr.vmem [resolvable:$true] %s198_s12  ;;  %s197_s17 = int_to_ptr.hbm [resolvable:$true] %s196_s17 }
  0x39   : > { %1831 = sst [smem:[#allocation25_spill]] %s1830_s18  ;;  %p1007_p6 = pnand %p1020_p2, %p1542_p10 }
  0x3a   : > { %s1832_s13 = sand.u32 1, %s1361_s20   ;;  %s187_s15 = scalar_lea.sflag [#allocation5], %s186_s21 }
  0x3b   : > { %s821_s23 = sshll.u32 %s1832_s13, 2  ;;  %s822_s18 = sshll.u32 %s1385_s26, 2 }
  0x3c   : > { %1009 = dma.hbm_to_vmem [thread:$0]  (!%p1007_p6), %s197_s17, 64, %s199_s12, %s187_s15  }
  0x3d   : > { %s231_s27 = scalar_lea.vmem [#allocation9], %s821_s23  ;;  %s235_s4 = scalar_lea.hbm %s1793_s2, %s822_s18 }
  0x3e   : > { %s239_s1 = sshll.u32 %s231_s27, 4  ;;  %s237_s3 = sshll.u32 %s235_s4, 4  ;;  %s240_s1 = int_to_ptr.vmem [resolvable:$true] %s239_s1  ;;  %s238_s3 = int_to_ptr.hbm [resolvable:$true] %s237_s3 }
  0x3f   : > { %1015 = dma.hbm_to_vmem [thread:$0]  (!%p1513_p4), %s238_s3, 64, %s240_s1, %s1517_s8  }
  0x40   : > { %248 = sbr.rel (%p1524_p7) target bundleno = 680 (0x2a8), region = 32  ;;  %s250_s29 = sand.u32 (!%p1524_p7), 1, %s1369_s22  }
  0x41   : > { %s1613_s11 = sshll.u32 (!%p1524_p7), %s250_s29, 2  ;;  %s251_s15 = scalar_lea.sflag (!%p1524_p7), [#allocation5], %s250_s29 }
  0x42   : > { %s254_s17 = scalar_lea.vmem (!%p1524_p7), [#allocation4], %s1613_s11 }
  0x45   : > { %1328 = dma.done.wait (%p1555_p0), %s251_s15, 64  }
  0x46   : > { %1330 = vsyncadd (%p1555_p0), %s251_s15, 4294967232  ;;  %s260_s23 = sand.u32 1, %s1529_s30   ;;  %s262_s24 = sand.u32 1, %s1357_s19  }
  0x47   : > { %s825_s27 = sshll.u32 %s262_s24, 8  ;;  %s261_s14 = scalar_lea.sflag [#allocation8], %s260_s23 }
  0x48   : > { %s1622_s8 = scalar_lea.vmem [#allocation7], %s825_s27 }
  0x49   : > { %1332 = dma.done.wait (%p1561_p5), %s261_s14, 4160  }
  0x4a   : > { %1334 = vsyncadd (%p1561_p5), %s261_s14, 4294963136  ;;  %s1628_s10 = sshll.u32 %s262_s24, 2  ;;  %s305_s12 = sand.u32 1, %s1345_s16  }
  0x4b   : > { %s827_s30 = sshll.u32 %s305_s12, 5  ;;  %p317_p2 = scmp.lt.s32.totalorder %s1381_s25, 1 }
  0x4c   : > { %s1833_s13 = sld [smem:[#allocation28_spill]]  ;;  %s274_s9 = scalar_lea.vmem [#allocation9], %s1628_s10 }
  0x4d   : > { %s318_s6 = scalar_select %p317_p2, %s1381_s25, 1 }
  0x4e   : > { %s1641_s5 = scalar_lea.vmem [#allocation10], %s827_s30  ;;  %s1834_s4 = sld [smem:[#allocation17_spill]] }
  0x4f   : > { %s828_s21 = sshll.u32 %s318_s6, 3 }
  0x52   : > { %s1638_s1 = scalar_lea.vmem %s1833_s13, %s828_s21 }
  0x54   : > { %p829_p4 = scmp.ne.s32.totalorder %s1834_s4, 0 }
  0x56   : > { %324 = sbr.rel (%p829_p4) target bundleno = 94 (0x5e), region = 48 }
  0x5b   : > { %vm325_vm0 = vcmask 7168   ;;  %v1398_v0 = vmov -inf   ;;  %v1399_v1 = vmov 0.0  }
  0x5c   : > { %326 = vst.msk [vmem:[#allocation2] sm:$0xff] %vm325_vm0, %v1398_v0 }
  0x5d   : > { %327 = vst.msk [vmem:[#allocation3] sm:$0xff] %vm325_vm0, %v1399_v1 }
  0x5e PF: > { %v944_v2 = vld [vmem:[%s1622_s8 + $0xe0] sm:$0xf]  ;;  %v996_v3 = vld [vmem:[%s1622_s8 + $0xec] sm:$0xf0]  ;;  %v994_v4 = vld [vmem:[%s1622_s8 + $0xe4] sm:$0xf] }
  0x5f   : > { %v945_v5 = vor.u32 %v996_v3, %v944_v2  ;;  %v946_v6 = vld [vmem:[%s1622_s8 + $0xf0] sm:$0xf0]  ;;  %v952_v7 = vld [vmem:[%s1622_s8 + $0xe8] sm:$0xf]  ;;  %v997_v8 = vld [vmem:[%s1622_s8 + $0xf4] sm:$0xf0] }
  0x60   : > { %v949_v9 = vor.u32 %v994_v4, %v946_v6  ;;  %v953_v10 = vor.u32 %v997_v8, %v952_v7  ;;  %v995_v11 = vld [vmem:[%s1622_s8 + $0xec] sm:$0xf]  ;;  %v954_v12 = vld [vmem:[%s1622_s8 + $0xf8] sm:$0xf0]  ;;  %v928_v13 = vld [vmem:[%s1622_s8 + $0xc0] sm:$0xf] }
  0x61   : > { %531 = vmatpush.bf16.msra.mxu0 %v945_v5  ;;  %v957_v14 = vor.u32 %v995_v11, %v954_v12  ;;  %v992_v15 = vld [vmem:[%s1622_s8 + $0xcc] sm:$0xf0]  ;;  %v990_v16 = vld [vmem:[%s1622_s8 + $0xc4] sm:$0xf]  ;;  %v930_v17 = vld [vmem:[%s1622_s8 + $0xd0] sm:$0xf0] }
  0x62   : > { %544 = vmatpush.bf16.msra.mxu1 %v949_v9  ;;  %557 = vmatpush.bf16.msra.mxu2 %v953_v10  ;;  %v929_v18 = vor.u32 %v992_v15, %v928_v13  ;;  %v933_v19 = vor.u32 %v990_v16, %v930_v17  ;;  %v936_v20 = vld [vmem:[%s1622_s8 + $0xc8] sm:$0xf]  ;;  %v993_v21 = vld [vmem:[%s1622_s8 + $0xd4] sm:$0xf0]  ;;  %v991_v22 = vld [vmem:[%s1622_s8 + $0xcc] sm:$0xf] }
  0x63   : > { %570 = vmatpush.bf16.msra.mxu3 %v957_v14  ;;  %v937_v23 = vor.u32 %v993_v21, %v936_v20  ;;  %v938_v24 = vld [vmem:[%s1622_s8 + $0xd8] sm:$0xf0]  ;;  %v912_v25 = vld [vmem:[%s1622_s8 + $0xa0] sm:$0xf]  ;;  %v988_v26 = vld [vmem:[%s1622_s8 + $0xac] sm:$0xf0] }
  0x64   : > { %v941_v27 = vor.u32 %v991_v22, %v938_v24  ;;  %v986_v28 = vld [vmem:[%s1622_s8 + $0xa4] sm:$0xf]  ;;  %v914_v29 = vld [vmem:[%s1622_s8 + $0xb0] sm:$0xf0]  ;;  %v920_v30 = vld [vmem:[%s1622_s8 + $0xa8] sm:$0xf]  ;;  %v913_v31 = vor.u32 %v988_v26, %v912_v25 }
  0x65   : > { %532 = vmatpush.bf16.msra.mxu0 %v929_v18  ;;  %v989_v32 = vld [vmem:[%s1622_s8 + $0xb4] sm:$0xf0]  ;;  %v987_v33 = vld [vmem:[%s1622_s8 + $0xac] sm:$0xf]  ;;  %v922_v34 = vld [vmem:[%s1622_s8 + $0xb8] sm:$0xf0]  ;;  %v917_v35 = vor.u32 %v986_v28, %v914_v29 }
  0x66   : > { %545 = vmatpush.bf16.msra.mxu1 %v933_v19  ;;  %558 = vmatpush.bf16.msra.mxu2 %v937_v23  ;;  %v921_v36 = vor.u32 %v989_v32, %v920_v30  ;;  %v896_v37 = vld [vmem:[%s1622_s8 + $0x80] sm:$0xf]  ;;  %v984_v38 = vld [vmem:[%s1622_s8 + $0x8c] sm:$0xf0]  ;;  %v982_v39 = vld [vmem:[%s1622_s8 + $0x84] sm:$0xf]  ;;  %v925_v40 = vor.u32 %v987_v33, %v922_v34 }
  0x67   : > { %571 = vmatpush.bf16.msra.mxu3 %v941_v27  ;;  %v898_v41 = vld [vmem:[%s1622_s8 + $0x90] sm:$0xf0]  ;;  %v904_v42 = vld [vmem:[%s1622_s8 + $0x88] sm:$0xf]  ;;  %v985_v43 = vld [vmem:[%s1622_s8 + $0x94] sm:$0xf0]  ;;  %v897_v46 = vor.u32 %v984_v38, %v896_v37 }
  0x68   : > { %v983_v44 = vld [vmem:[%s1622_s8 + $0x8c] sm:$0xf]  ;;  %v906_v45 = vld [vmem:[%s1622_s8 + $0x98] sm:$0xf0]  ;;  %v901_v47 = vor.u32 %v982_v39, %v898_v41  ;;  %v905_v48 = vor.u32 %v985_v43, %v904_v42  ;;  %v880_v49 = vld [vmem:[%s1622_s8 + $0x60] sm:$0xf] }
  0x69   : > { %533 = vmatpush.bf16.msra.mxu0 %v913_v31  ;;  %v980_v50 = vld [vmem:[%s1622_s8 + $0x6c] sm:$0xf0]  ;;  %v978_v51 = vld [vmem:[%s1622_s8 + $0x64] sm:$0xf]  ;;  %v909_v52 = vor.u32 %v983_v44, %v906_v45  ;;  %v882_v53 = vld [vmem:[%s1622_s8 + $0x70] sm:$0xf0] }
  0x6a   : > { %546 = vmatpush.bf16.msra.mxu1 %v917_v35  ;;  %559 = vmatpush.bf16.msra.mxu2 %v921_v36  ;;  %v888_v54 = vld [vmem:[%s1622_s8 + $0x68] sm:$0xf]  ;;  %v981_v55 = vld [vmem:[%s1622_s8 + $0x74] sm:$0xf0]  ;;  %v979_v56 = vld [vmem:[%s1622_s8 + $0x6c] sm:$0xf]  ;;  %v881_v58 = vor.u32 %v980_v50, %v880_v49  ;;  %v885_v59 = vor.u32 %v978_v51, %v882_v53 }
  0x6b   : > { %572 = vmatpush.bf16.msra.mxu3 %v925_v40  ;;  %v890_v57 = vld [vmem:[%s1622_s8 + $0x78] sm:$0xf0]  ;;  %v889_v60 = vor.u32 %v981_v55, %v888_v54  ;;  %v864_v61 = vld [vmem:[%s1622_s8 + $0x40] sm:$0xf]  ;;  %v976_v62 = vld [vmem:[%s1622_s8 + $0x4c] sm:$0xf0] }
  0x6c   : > { %v974_v63 = vld [vmem:[%s1622_s8 + $0x44] sm:$0xf]  ;;  %v893_v0 = vor.u32 %v979_v56, %v890_v57  ;;  %v866_v1 = vld [vmem:[%s1622_s8 + $0x50] sm:$0xf0]  ;;  %v872_v2 = vld [vmem:[%s1622_s8 + $0x48] sm:$0xf]  ;;  %v865_v6 = vor.u32 %v976_v62, %v864_v61 }
  0x6d   : > { %534 = vmatpush.bf16.msra.mxu0 %v897_v46  ;;  %v977_v3 = vld [vmem:[%s1622_s8 + $0x54] sm:$0xf0]  ;;  %v975_v4 = vld [vmem:[%s1622_s8 + $0x4c] sm:$0xf]  ;;  %v874_v5 = vld [vmem:[%s1622_s8 + $0x58] sm:$0xf0]  ;;  %v869_v7 = vor.u32 %v974_v63, %v866_v1 }
  0x6e   : > { %547 = vmatpush.bf16.msra.mxu1 %v901_v47  ;;  %560 = vmatpush.bf16.msra.mxu2 %v905_v48  ;;  %v873_v8 = vor.u32 %v977_v3, %v872_v2  ;;  %v848_v9 = vld [vmem:[%s1622_s8 + $0x20] sm:$0xf]  ;;  %v972_v10 = vld [vmem:[%s1622_s8 + $0x2c] sm:$0xf0]  ;;  %v970_v11 = vld [vmem:[%s1622_s8 + $0x24] sm:$0xf]  ;;  %v877_v12 = vor.u32 %v975_v4, %v874_v5 }
  0x6f   : > { %573 = vmatpush.bf16.msra.mxu3 %v909_v52  ;;  %v850_v13 = vld [vmem:[%s1622_s8 + $0x30] sm:$0xf0]  ;;  %v856_v14 = vld [vmem:[%s1622_s8 + $0x28] sm:$0xf]  ;;  %v973_v15 = vld [vmem:[%s1622_s8 + $0x34] sm:$0xf0]  ;;  %v849_v18 = vor.u32 %v972_v10, %v848_v9 }
  0x70   : > { %v971_v16 = vld [vmem:[%s1622_s8 + $0x2c] sm:$0xf]  ;;  %v858_v17 = vld [vmem:[%s1622_s8 + $0x38] sm:$0xf0]  ;;  %v853_v19 = vor.u32 %v970_v11, %v850_v13  ;;  %v857_v20 = vor.u32 %v973_v15, %v856_v14  ;;  %v832_v21 = vld [vmem:[%s1622_s8] sm:$0xf] }
  0x71   : > { %535 = vmatpush.bf16.msra.mxu0 %v881_v58  ;;  %v968_v22 = vld [vmem:[%s1622_s8 + $0xc] sm:$0xf0]  ;;  %v966_v23 = vld [vmem:[%s1622_s8 + $0x4] sm:$0xf]  ;;  %v861_v24 = vor.u32 %v971_v16, %v858_v17  ;;  %v834_v25 = vld [vmem:[%s1622_s8 + $0x10] sm:$0xf0] }
  0x72   : > { %548 = vmatpush.bf16.msra.mxu1 %v885_v59  ;;  %561 = vmatpush.bf16.msra.mxu2 %v889_v60  ;;  %v840_v26 = vld [vmem:[%s1622_s8 + $0x8] sm:$0xf]  ;;  %v969_v27 = vld [vmem:[%s1622_s8 + $0x14] sm:$0xf0]  ;;  %v967_v28 = vld [vmem:[%s1622_s8 + $0xc] sm:$0xf]  ;;  %v833_v30 = vor.u32 %v968_v22, %v832_v21  ;;  %v837_v31 = vor.u32 %v966_v23, %v834_v25 }
  0x73   : > { %574 = vmatpush.bf16.msra.mxu3 %v893_v0  ;;  %v842_v29 = vld [vmem:[%s1622_s8 + $0x18] sm:$0xf0]  ;;  %v841_v32 = vor.u32 %v969_v27, %v840_v26  ;;  %v361_v35 = vld [vmem:[%s274_s9] sm:$0xf]  ;;  %v1400_v55 = vmov 0   ;;  %v583_v56 = vld [vmem:[#allocation2] sm:$0xff] }
  0x74   : > { %v845_v33 = vor.u32 %v967_v28, %v842_v29  ;;  %v328_v34 = vld [vmem:[%s254_s17] sm:$0xf]  ;;  %v363_v36 = vperm.slane %v361_v35, 0  ;;  %v364_v37 = vperm.slane %v361_v35, 1  ;;  %v365_v42 = vperm.slane %v361_v35, 2  ;;  %1140 = vset.pattern.permute.xlu0 %v1400_v55  ;;  %v590_v14 = vld [vmem:[#allocation3] sm:$0xff] }
  0x75   : > { %536 = vmatpush.bf16.msra.mxu0 %v865_v6  ;;  %v366_v43 = vperm.slane %v361_v35, 3  ;;  %vm618_vm1 = vcmask 7168   ;;  %s1835_s3 = sld [smem:[#allocation17_spill]] }
  0x76   : > { %549 = vmatpush.bf16.msra.mxu1 %v869_v7  ;;  %562 = vmatpush.bf16.msra.mxu2 %v873_v8 }
  0x77   : > { %575 = vmatpush.bf16.msra.mxu3 %v877_v12 }
  0x79   : > { %537 = vmatpush.bf16.msra.mxu0 %v849_v18 }
  0x7a   : > { %550 = vmatpush.bf16.msra.mxu1 %v853_v19  ;;  %563 = vmatpush.bf16.msra.mxu2 %v857_v20 }
  0x7b   : > { %576 = vmatpush.bf16.msra.mxu3 %v861_v24  ;;  %p958_p7 = scmp.ne.s32.totalorder %s1835_s3, 3 }
  0x7d   : > { %538 = vmatpush.bf16.msra.mxu0 %v833_v30 }
  0x7e   : > { %551 = vmatpush.bf16.msra.mxu1 %v837_v31  ;;  %564 = vmatpush.bf16.msra.mxu2 %v841_v32 }
  0x7f   : > { %577 = vmatpush.bf16.msra.mxu3 %v845_v33 }
  0x80   : > { %539 = vmatmul.bf16.vlgmr.msra.gmra.mxu0 %v328_v34 }
  0x81   : > { %552 = vmatmul.bf16.vlgmr.msra.gmra.mxu1 %v328_v34  ;;  %565 = vmatmul.bf16.vlgmr.msra.gmra.mxu2 %v328_v34 }
  0x82   : > { %578 = vmatmul.bf16.vlgmr.msra.gmra.mxu3 %v328_v34 }
  0xfd   : > { %v540_v38 = vpop.f32.mrf.mxu0 }
  0xfe   : > { %v541_v39 = vadd.f32 %v540_v38, %v363_v36  ;;  %v553_v40 = vpop.f32.mrf.mxu1 }
  0xff   : > { %v554_v41 = vadd.f32 %v553_v40, %v364_v37 }
 0x100   : > { %621 = vst [vmem:[%s1641_s5] sm:$0xff] %v541_v39 }
 0x101   : > { %622 = vst [vmem:[%s1641_s5 + $0x8] sm:$0xff] %v554_v41  ;;  %v584_v50 = vmax.f32 %v541_v39, %v554_v41 }
 0x104   : > { %v566_v44 = vpop.f32.mrf.mxu2 }
 0x105   : > { %v567_v45 = vadd.f32 %v566_v44, %v365_v42  ;;  %v579_v46 = vpop.f32.mrf.mxu3  ;;  %v542_v47 = vpop.f32.mrf.mxu0 }
 0x106   : > { %v580_v48 = vadd.f32 %v579_v46, %v366_v43  ;;  %v555_v49 = vpop.f32.mrf.mxu1 }
 0x107   : > { %623 = vst [vmem:[%s1641_s5 + $0x10] sm:$0xff] %v567_v45 }
 0x108   : > { %624 = vst [vmem:[%s1641_s5 + $0x18] sm:$0xff] %v580_v48  ;;  %v585_v51 = vmax.f32 %v567_v45, %v580_v48 }
 0x10a   : > { %v586_v52 = vmax.f32 %v584_v50, %v585_v51 }
 0x10c   : > { %587 = vmax.xlane.f32.xlu0 %v586_v52  ;;  %v568_v53 = vpop.f32.mrf.mxu2 }
 0x10d   : > { %v581_v54 = vpop.f32.mrf.mxu3 }
 0x17f   : > { %v588_v57 = vpop.xlane.xlu0 %587 }
 0x180   : > { %v589_v58 = vmax.f32 %v583_v56, %v588_v57 }
 0x182   : > { %v591_v59 = vsub.f32 %v583_v56, %v589_v58  ;;  %620 = vst.msk [vmem:[#allocation2] sm:$0xff] %vm618_vm1, %v589_v58  ;;  %597 = vperm.xlu0 %1140, %v589_v58  }
 0x184   : > { %v592_v12 = vmul.f32 1.442695, %v591_v59 }
 0x1f4   : > { %v598_v60 = vpop.permute.xlu0 %597 }
 0x1f5   : > { %v600_v61 = vsub.f32 %v541_v39, %v598_v60  ;;  %v601_v62 = vsub.f32 %v554_v41, %v598_v60  ;;  %v602_v63 = vsub.f32 %v567_v45, %v598_v60  ;;  %v603_v0 = vsub.f32 %v580_v48, %v598_v60 }
 0x1f7   : > { %v604_v1 = vmul.f32 1.442695, %v600_v61  ;;  %v606_v2 = vmul.f32 1.442695, %v601_v62  ;;  %v608_v3 = vmul.f32 1.442695, %v602_v63 }
 0x1f8   : > { %v610_v4 = vmul.f32 1.442695, %v603_v0 }
 0x1f9   : > { %1141 = vpow2.f32 %v604_v1 }
 0x1fa   : > { %1143 = vpow2.f32 %v606_v2 }
 0x1fb   : > { %1145 = vpow2.f32 %v608_v3 }
 0x1fc   : > { %1147 = vpow2.f32 %v610_v4 }
 0x1fd   : > { %1149 = vpow2.f32 %v592_v12 }
 0x1ff   : > { %v1142_v5 = vpop.eup %1141 }
 0x200   : > { %v1144_v6 = vpop.eup %1143 }
 0x201   : > { %v612_v7 = vadd.f32 %v1144_v6, %v1142_v5  ;;  %v1146_v8 = vpop.eup %1145 }
 0x202   : > { %v1148_v10 = vpop.eup %1147 }
 0x203   : > { %v613_v9 = vadd.f32 %v1146_v8, %v612_v7  ;;  %v1150_v13 = vpop.eup %1149 }
 0x204   : > { %v594_v15 = vmul.f32 %v1150_v13, %v590_v14 }
 0x205   : > { %v614_v11 = vadd.f32 %v1148_v10, %v613_v9 }
 0x207   : > { %615 = vadd.xlane.f32.xlu1 %v614_v11 }
 0x279   : > { %628 = sbr.rel (%p958_p7) target bundleno = 657 (0x291), region = 52 }
 0x27a   : > { %v616_v16 = vpop.xlane.xlu1 %615 }
 0x27b   : > { %v617_v17 = vadd.f32 %v616_v16, %v594_v15 }
 0x27d   : > { %619 = vst.msk [vmem:[#allocation3] sm:$0xff] %vm618_vm1, %v617_v17 }
 0x27e   : > { %v629_v20 = vld [vmem:[#allocation2] sm:$0xff] }
 0x284   : > { %v630_v18 = vld [vmem:[#allocation3] sm:$0xff] }
 0x285   : > { %1151 = vlog2.f32 %v630_v18 }
 0x28b   : > { %v1152_v19 = vpop.eup %1151 }
 0x28c   : > { %v632_v21 = vmul.f32 0.6931472, %v1152_v19 }
 0x28e   : > { %v633_v22 = vadd.f32 %v632_v21, %v629_v20 }
 0x290   : > { %634 = vst.msk [vmem:[%s1638_s1] sm:$0xff] %vm618_vm1, %v633_v22 }
 0x291 PF: > { %s1836_s29 = sld [smem:[#allocation17_spill]]  ;;  %s961_s17 = sshll.u32 %s1381_s25, 4 }
 0x292   : > { %s655_s23 = sshll.u32 %s1641_s5, 4  ;;  %s1838_s10 = sld [smem:[#allocation27_spill]]  ;;  %s656_s23 = int_to_ptr.vmem [resolvable:$true] %s655_s23 }
 0x293   : > { %s636_s21 = scalar_lea.sflag [#allocation6], %s305_s12 }
 0x297   : > { %s960_s15 = sshll.u32 %s1836_s29, 2 }
 0x298   : > { %s651_s24 = sadd.s32 %s961_s17, %s960_s15  ;;  %s1263_s1 = scalar_lea.hbm %s1838_s10, 256 }
 0x299   : > { %s962_s27 = sshll.u32 %s651_s24, 3 }
 0x29a   : > { %s653_s30 = scalar_lea.hbm %s1838_s10, %s962_s27 }
 0x29b   : > { %s657_s6 = sshll.u32 %s653_s30, 4  ;;  %s658_s6 = int_to_ptr.hbm [resolvable:$true] %s657_s6 }
 0x29c   : > { %s1257_s18 = sshra.s32 %s658_s6, 4  ;;  %s1258_s18 = int_to_ptr.hbm [resolvable:$true] %s1257_s18 }
 0x29d   : > { %s1259_s7 = scalar_lea.hbm %s1258_s18, 32  ;;  %p1264_p8 = scmp.lt.s32.totalorder %s1258_s18, %s1838_s10 }
 0x29e   : > { %p1260_p10 = scmp.ne.s32.totalorder %s1258_s18, %s1259_s7  ;;  %p1265_p9 = scmp.lt.s32.totalorder %s1263_s1, %s1259_s7 }
 0x2a0   : > { %p1261_p0 = pnand %p1260_p10, %p1580_p12  ;;  %p1266_p11 = por %p1265_p9, %p1264_p8 }
 0x2a2   : > { %p1262_p5 = pneg %p1261_p0 }
 0x2a4   : > { %p1267_p13 = pnand %p1266_p11, %p1262_p5 }
 0x2a6   : > { %1270 = shalt.err (!%p1267_p13)
}
 0x2a7   : > { %1004 = dma.vmem_to_hbm [thread:$0]  (%p1580_p12), %s656_s23, 512, %s658_s6, %s636_s21  }
 0x2a8 PF: > { %s1839_s12 = sld [smem:[#allocation14_spill]]  ;;  %p1021_p1 = scmp.ge.s32.totalorder %s1393_s28, 2 }
 0x2aa   : > { %p1017_p6 = pnand %p1021_p1, %p1589_p3 }
 0x2ac   : > { %p1018_p2 = pneg %p1017_p6 }
 0x2ae   : > { %s672_s3 = sand.u32 1, %s1839_s12  }
 0x2af   : > { %s673_s29 = scalar_lea.sflag [#allocation6], %s672_s3 }
 0x2b0   : > { %1336 = dma.done.wait (%p1018_p2), %s673_s29, 512  }
 0x2b1   : > { %1338 = vsyncadd (%p1018_p2), %s673_s29, 4294966784  ;;  %s24_s28 = sadd.s32 1, %s1393_s28   ;;  %s1842_s11 = sld [smem:[#allocation15_spill]] }
 0x2b2   : > { %p1744_p4 = scmp.ge.s32.totalorder %s24_s28, 10   ;;  %s1843_s17 = sld [smem:[#allocation23_spill]] }
 0x2b3   : > { %s1844_s23 = sld [smem:[#allocation21_spill]]  ;;  %s1851_s15 = smov %s1345_s16 }
 0x2b4   : > { %s1845_s24 = sld [smem:[#allocation16_spill]]  ;;  %s1853_s18 = smov %s1357_s19 }
 0x2b5   : > { %s1846_s27 = sld [smem:[#allocation22_spill]]  ;;  %s1854_s19 = smov %s1361_s20 }
 0x2b6   : > { %s1847_s25 = sld [smem:[#allocation18_spill]]  ;;  %s1856_s21 = smov %s1369_s22 }
 0x2b7   : > { %s1848_s14 = sld [smem:[#allocation19_spill]]  ;;  %s1852_s16 = smov %s1842_s11 }
 0x2b8   : > { %s1849_s8 = sld [smem:[#allocation20_spill]] }
 0x2b9   : > { %s1855_s20 = smov %s1844_s23 }
 0x2ba   : > { %s1857_s22 = smov %s1845_s24  ;;  %s1859_s24 = smov %s1385_s26 }
 0x2bb   : > { %s1858_s23 = smov %s1846_s27  ;;  %23 = sbr.rel (!%p1744_p4) target bundleno = 16 (0x10), region = 121 }
 0x2bd   : > { %s1860_s26 = smov %s1848_s14 }
 0x2be   : > { %s1861_s27 = smov %s1849_s8 }
 0x2c0   :  { %686 = vsyncpa [#allocation5], 1 }
 0x2c1   :  { %688 = vsyncpa [#allocation5 + $0x1], 1 }
 0x2c2   :  { %689 = vsyncpa [#allocation8], 1 }
 0x2c3   :  { %691 = vsyncpa [#allocation8 + $0x1], 1 }
 0x2c4   :  { %692 = vsyncpa [#allocation6], 1 }
 0x2c5   :  { %694 = vsyncpa [#allocation6 + $0x1], 1 }

</bundles_post_ra>
